<compile_context>
chip_gen: v7x
topology: tpu7x:2x2x1
jax: 0.10.0
libtpu: 0.0.40
codegen_flags: <defaults>
</compile_context>

<pallas_src>
import functools

import jax
import jax.numpy as jnp
from jax.experimental import pallas as pl
from jax.experimental.pallas import tpu as pltpu

_BN_EPS = 1e-5
_TM_MAX = 256   # output-row tile cap (keeps per-step VMEM bounded on all gens)
_TN_MAX = 256   # output-lane tile cap


def _round_up(x, m):
    return (x + m - 1) // m * m


def _cdiv(a, b):
    return (a + b - 1) // b


# ---------------------------------------------------------------------------
# Pallas kernels
# ---------------------------------------------------------------------------
def _mm_bias_kernel(a_ref, b_ref, bias_ref, o_ref, *, relu):
    """o = relu?( a @ b + bias ) — conv/fc hot path (bf16 MXU, f32 accumulate)."""
    acc = jnp.dot(a_ref[...], b_ref[...], preferred_element_type=jnp.float32)
    y = acc + bias_ref[...]
    if relu:
        y = jnp.maximum(y, 0.0)
    o_ref[...] = y.astype(o_ref.dtype)


def _mm_bias_res_kernel(a_ref, b_ref, bias_ref, id_ref, o_ref, *, relu):
    """o = relu?( a @ b + bias + identity ) — residual add fused into conv2."""
    acc = jnp.dot(a_ref[...], b_ref[...], preferred_element_type=jnp.float32)
    y = acc + bias_ref[...] + id_ref[...].astype(jnp.float32)
    if relu:
        y = jnp.maximum(y, 0.0)
    o_ref[...] = y.astype(o_ref.dtype)


def _mm_dual_kernel(a_ref, b_ref, bias_ref, wd_ref, bd_ref, o_ref, oid_ref, *,
                    relu, cin, tap_off):
    """Fused block conv1 (3x3 im2col matmul) + 1x1 downsample branch.

    The downsample's im2col patches are exactly the centre-tap column slab of
    conv1's patch matrix, so both branches share a single A tile / DMA and one
    pallas_call; the identity branch comes out as a second output.
    """
    a = a_ref[...]
    y = jnp.dot(a, b_ref[...], preferred_element_type=jnp.float32) + bias_ref[...]
    if relu:
        y = jnp.maximum(y, 0.0)
    o_ref[...] = y.astype(o_ref.dtype)
    centre = a_ref[:, tap_off:tap_off + cin]        # lane slab at 128-aligned offset
    ident = jnp.dot(centre, wd_ref[...], preferred_element_type=jnp.float32)
    oid_ref[...] = (ident + bd_ref[...]).astype(oid_ref.dtype)


def _maxpool_kernel(*refs, oh):
    """Max over the 9 pooling taps; taps are unit-stride leading-dim slices of
    six pre-phased views, so the reduction happens entirely in registers."""
    srcs, o_ref = refs[:-1], refs[-1]
    acc = None
    for i in range(3):          # kernel row
        for j in range(3):      # kernel col
            ref = srcs[(i % 2) * 3 + j]
            tap = ref[0, i // 2:i // 2 + oh, :, :]
            acc = tap if acc is None else jnp.maximum(acc, tap)
    o_ref[0] = acc


def _gap_fc_kernel(x_ref, w_ref, b_ref, o_ref):
    """Fused AdaptiveAvgPool2d((1,1)) + Linear: (B,HW,C) -> (B, N_pad) f32."""
    feat = jnp.mean(x_ref[...].astype(jnp.float32), axis=1)              # (B, C)
    o_ref[...] = (jnp.dot(feat.astype(jnp.bfloat16), w_ref[...],
                          preferred_element_type=jnp.float32) + b_ref[...])


# ---------------------------------------------------------------------------
# Tiling / grid planning
# ---------------------------------------------------------------------------
def _tile_plan(M, N, K):
    """Pick (TM, TN) and the grid order.

    Aims: lane-dense output tiles, >=2 tiles whenever the problem allows (so
    both v7x TensorCores get work), bounded VMEM, and when both grid axes are
    >1, the order that keeps the heavier operand resident (fewest re-streamed
    HBM bytes).
    """
    TM = min(_TM_MAX, _round_up(M, 8))
    if M >= 16 and _cdiv(M, TM) < 2:
        TM = _round_up(_cdiv(M, 2), 8)          # force >=2 M tiles
    Mp = _round_up(M, TM)
    gm = Mp // TM

    if N <= 128 or N % 128 != 0:
        TN = N
    elif gm >= 2 and N % 256 == 0:
        TN = min(_TN_MAX, 256)
    else:
        TN = 128                                # gm == 1: split N across cores
    gn = N // TN

    if gm > 1 and gn > 1:
        swap = gm * K * N > gn * M * K          # re-stream the smaller operand
    else:
        swap = gn > gm                          # multi-tile axis goes first
    return TM, TN, Mp, gm, gn, swap


def _grid_maps(gm, gn, swap):
    """Return (grid, A-map, weight-map, row-vector-map, output-map)."""
    if swap:
        return ((gn, gm),
                lambda j, i: (i, 0),
                lambda j, i: (0, j),
                lambda j, i: (0, j),
                lambda j, i: (i, j))
    return ((gm, gn),
            lambda i, j: (i, 0),
            lambda i, j: (0, j),
            lambda i, j: (0, j),
            lambda i, j: (i, j))


# ---------------------------------------------------------------------------
# Kernel wrappers
# ---------------------------------------------------------------------------
def matmul_bias_act(a, b, bias, identity=None, relu=True, out_dtype=jnp.bfloat16):
    """(M,K)@(K,N) + bias[1,N] (+ identity[M,N]) with optional ReLU.

    Tiled over (M, N); K stays whole (<= 4608 for ResNet-18). Operands bf16,
    accumulation / affine in f32.
    """
    M, K = a.shape
    Kb, N = b.shape
    assert K == Kb, (K, Kb)
    a = a.astype(jnp.bfloat16)

    TM, TN, Mp, gm, gn, swap = _tile_plan(M, N, K)
    if Mp > M:
        a = jnp.pad(a, ((0, Mp - M), (0, 0)))
    grid, im_a, im_b, im_v, im_o = _grid_maps(gm, gn, swap)

    in_specs = [pl.BlockSpec((TM, K), im_a),
                pl.BlockSpec((K, TN), im_b),
                pl.BlockSpec((1, TN), im_v)]
    args = [a, b, bias]
    if identity is not None:
        identity = identity.astype(jnp.bfloat16)
        if Mp > M:
            identity = jnp.pad(identity, ((0, Mp - M), (0, 0)))
        in_specs.append(pl.BlockSpec((TM, TN), im_o))
        args.append(identity)
        kernel = functools.partial(_mm_bias_res_kernel, relu=relu)
    else:
        kernel = functools.partial(_mm_bias_kernel, relu=relu)

    out = pl.pallas_call(
        kernel,
        out_shape=jax.ShapeDtypeStruct((Mp, N), out_dtype),
        grid=grid,
        in_specs=in_specs,
        out_specs=pl.BlockSpec((TM, TN), im_o),
        compiler_params=pltpu.CompilerParams(
            dimension_semantics=("parallel", "parallel")),
    )(*args)
    return out[:M] if Mp > M else out


def matmul_bias_dual(a, b, bias, wd, bd, cin, relu=True, out_dtype=jnp.bfloat16):
    """Fused conv1 + 1x1 downsample: one patch matrix, two outputs."""
    M, K = a.shape
    _, N = b.shape
    a = a.astype(jnp.bfloat16)

    TM, TN, Mp, gm, gn, swap = _tile_plan(M, N, K)
    if Mp > M:
        a = jnp.pad(a, ((0, Mp - M), (0, 0)))
    grid, im_a, im_b, im_v, im_o = _grid_maps(gm, gn, swap)

    out, ident = pl.pallas_call(
        functools.partial(_mm_dual_kernel, relu=relu, cin=cin, tap_off=4 * cin),
        out_shape=(jax.ShapeDtypeStruct((Mp, N), out_dtype),
                   jax.ShapeDtypeStruct((Mp, N), out_dtype)),
        grid=grid,
        in_specs=[pl.BlockSpec((TM, K), im_a),
                  pl.BlockSpec((K, TN), im_b),
                  pl.BlockSpec((1, TN), im_v),
                  pl.BlockSpec((cin, TN), im_b),
                  pl.BlockSpec((1, TN), im_v)],
        out_specs=(pl.BlockSpec((TM, TN), im_o),
                   pl.BlockSpec((TM, TN), im_o)),
        compiler_params=pltpu.CompilerParams(
            dimension_semantics=("parallel", "parallel")),
    )(a, b, bias, wd, bd)
    if Mp > M:
        out, ident = out[:M], ident[:M]
    return out, ident


def maxpool3x3s2(x):
    """MaxPool2d(kernel=3, stride=2, padding=1), NHWC."""
    B, H, W, C = x.shape
    assert H % 2 == 0 and W % 2 == 0, "even spatial dims expected"
    xp = jnp.pad(x, ((0, 0), (1, 1), (1, 1), (0, 0)), constant_values=-jnp.inf)
    Hp, Wp = H + 2, W + 2
    oh = (Hp - 3) // 2 + 1
    ow = (Wp - 3) // 2 + 1
    # Six row-parity x kernel-column phase views (~1.5x input bytes). Remaining
    # tap selection in-kernel is a unit-stride slice of the leading dim (free).
    srcs = []
    for q in range(2):          # output-row parity (kernel row i % 2)
        for j in range(3):      # kernel column
            srcs.append(xp[:, q::2, j:j + 2 * ow:2, :])
    hh = srcs[0].shape[1]
    spec = pl.BlockSpec((1, hh, ow, C), lambda b: (b, 0, 0, 0))
    return pl.pallas_call(
        functools.partial(_maxpool_kernel, oh=oh),
        out_shape=jax.ShapeDtypeStruct((B, oh, ow, C), x.dtype),
        grid=(B,),
        in_specs=[spec] * 6,
        out_specs=pl.BlockSpec((1, oh, ow, C), lambda b: (b, 0, 0, 0)),
        compiler_params=pltpu.CompilerParams(dimension_semantics=("parallel",)),
    )(*srcs)


def gap_fc(x, w, b, num_class):
    """Fused global average pool + fc. x: NHWC bf16, w: (C, Npad) bf16."""
    B, H, W, C = x.shape
    xf = x.reshape(B, H * W, C).astype(jnp.bfloat16)
    ncp = w.shape[1]
    logits = pl.pallas_call(
        _gap_fc_kernel,
        out_shape=jax.ShapeDtypeStruct((B, ncp), jnp.float32),
    )(xf, w, b)
    return logits[:, :num_class]


# ---------------------------------------------------------------------------
# Conv = NHWC im2col (lane-dense glue) + fused Pallas matmul kernel
# ---------------------------------------------------------------------------
def _im2col_nhwc(x, kh, kw, stride, pad, kp):
    B, H, W, C = x.shape
    xp = jnp.pad(x, ((0, 0), (pad, pad), (pad, pad), (0, 0))) if pad else x
    Hp, Wp = H + 2 * pad, W + 2 * pad
    oh = (Hp - kh) // stride + 1
    ow = (Wp - kw) // stride + 1
    cols = []
    for i in range(kh):
        for j in range(kw):
            cols.append(xp[:, i:i + stride * oh:stride, j:j + stride * ow:stride, :])
    k = kh * kw * C
    if kp > k:  # K padded (to the bf16 sublane) together with the weight matrix
        cols.append(jnp.zeros((B, oh, ow, kp - k), x.dtype))
    patches = jnp.concatenate(cols, axis=-1).reshape(B * oh * ow, kp)
    return patches, oh, ow


def conv_block(x, cw, identity=None, relu=True):
    """conv + (folded) BN bias + optional residual + optional ReLU, NHWC."""
    B = x.shape[0]
    kp, cout = cw["wm"].shape
    patches, oh, ow = _im2col_nhwc(x, cw["kh"], cw["kw"], cw["stride"], cw["pad"], kp)
    idf = identity.reshape(B * oh * ow, cout) if identity is not None else None
    y = matmul_bias_act(patches, cw["wm"], cw["bias"], identity=idf, relu=relu)
    return y.reshape(B, oh, ow, cout)


def conv_block_dual(x, cw, dw):
    """Block conv1 (3x3,s) + BN + ReLU and fused 1x1 downsample + BN, NHWC."""
    B, _, _, cin = x.shape
    kp, cout = cw["wm"].shape
    patches, oh, ow = _im2col_nhwc(x, 3, 3, cw["stride"], 1, kp)
    y, ident = matmul_bias_dual(patches, cw["wm"], cw["bias"],
                                dw["wm"], dw["bias"], cin, relu=True)
    return y.reshape(B, oh, ow, cout), ident.reshape(B, oh, ow, cout)


# ---------------------------------------------------------------------------
# ResNet-18 parameters (raw, PyTorch-like) + host-side preparation
# ---------------------------------------------------------------------------
def _init_conv(key, cout, cin, k):
    fan_in = cin * k * k
    std = (2.0 / fan_in) ** 0.5
    return jax.random.normal(key, (cout, cin, k, k), jnp.float32) * std


def _init_bn(c):
    # (gamma, beta, running_mean, running_var)
    return (jnp.ones((c,), jnp.float32), jnp.zeros((c,), jnp.float32),
            jnp.zeros((c,), jnp.float32), jnp.ones((c,), jnp.float32))


def build_resnet18_params(key, num_class):
    keys = jax.random.split(key, 32)
    ki = iter(keys)
    params = {"conv1": _init_conv(next(ki), 64, 3, 7), "bn1": _init_bn(64),
              "layers": []}
    cfg = [(64, 64, 1), (64, 128, 2), (128, 256, 2), (256, 512, 2)]
    for cin, cout, stride in cfg:
        blocks = []
        for b in range(2):
            s = stride if b == 0 else 1
            in_c = cin if b == 0 else cout
            block = {"stride": s,
                     "conv1": _init_conv(next(ki), cout, in_c, 3), "bn1": _init_bn(cout),
                     "conv2": _init_conv(next(ki), cout, cout, 3), "bn2": _init_bn(cout)}
            if s != 1 or in_c != cout:
                block["down_conv"] = _init_conv(next(ki), cout, in_c, 1)
                block["down_bn"] = _init_bn(cout)
            blocks.append(block)
        params["layers"].append(blocks)
    bound = (1.0 / 512) ** 0.5
    params["fc_w"] = jax.random.uniform(next(ki), (num_class, 512), jnp.float32, -bound, bound)
    params["fc_b"] = jax.random.uniform(next(ki), (num_class,), jnp.float32, -bound, bound)
    return params


def _prep_conv(w, bn, stride, pad):
    """Fold BN scale into weights, reshape to (K, Cout), pad K to 16, bf16."""
    gamma, beta, mean, var = bn
    scale = gamma / jnp.sqrt(var + _BN_EPS)
    bias = beta - mean * scale
    w = w * scale[:, None, None, None]
    cout, cin, kh, kw = w.shape
    k = kh * kw * cin
    kp = _round_up(k, 16)                      # bf16 sublane only (no 128 pad)
    wm = jnp.transpose(w, (2, 3, 1, 0)).reshape(k, cout)
    if kp > k:
        wm = jnp.pad(wm, ((0, kp - k), (0, 0)))
    return {"wm": wm.astype(jnp.bfloat16),
            "bias": bias.reshape(1, cout).astype(jnp.float32),
            "kh": kh, "kw": kw, "stride": stride, "pad": pad}


def prepare_params(raw):
    prep = {"conv1": _prep_conv(raw["conv1"], raw["bn1"], 2, 3), "layers": []}
    for blocks in raw["layers"]:
        pblocks = []
        for b in blocks:
            pb = {"conv1": _prep_conv(b["conv1"], b["bn1"], b["stride"], 1),
                  "conv2": _prep_conv(b["conv2"], b["bn2"], 1, 1)}
            if "down_conv" in b:
                pb["down"] = _prep_conv(b["down_conv"], b["down_bn"], b["stride"], 0)
            pblocks.append(pb)
        prep["layers"].append(pblocks)
    # fc: pad the output dim to 128 lanes once on the host; slice after the call.
    num_class = raw["fc_w"].shape[0]
    ncp = _round_up(max(num_class, 128), 128)
    fc_w = jnp.pad(raw["fc_w"].T, ((0, 0), (0, ncp - num_class)))        # (512, ncp)
    fc_b = jnp.pad(raw["fc_b"], (0, ncp - num_class)).reshape(1, ncp)
    prep["fc_w"] = fc_w.astype(jnp.bfloat16)
    prep["fc_b"] = fc_b.astype(jnp.float32)
    prep["num_class"] = num_class
    return prep


# ---------------------------------------------------------------------------
# Forward
# ---------------------------------------------------------------------------
def resnet18_forward(prep, x):
    """x: NCHW float32 (PyTorch layout). Internally NHWC bf16."""
    x = jnp.transpose(x, (0, 2, 3, 1)).astype(jnp.bfloat16)
    x = conv_block(x, prep["conv1"], relu=True)               # 7x7 s2 + BN + ReLU
    x = maxpool3x3s2(x)
    for blocks in prep["layers"]:
        for blk in blocks:
            if "down" in blk:
                # conv1 + BN + ReLU and 1x1 downsample + BN in ONE kernel
                out, identity = conv_block_dual(x, blk["conv1"], blk["down"])
            else:
                identity = x
                out = conv_block(x, blk["conv1"], relu=True)
            # conv2 + BN bias + residual add + ReLU fused in one kernel
            x = conv_block(out, blk["conv2"], identity=identity, relu=True)
    # Global average pool + fc fused in one kernel; logits f32.
    return gap_fc(x, prep["fc_w"], prep["fc_b"], prep["num_class"])


if __name__ == "__main__":
    key = jax.random.PRNGKey(0)
    pkey, xkey = jax.random.split(key)
    num_class = 10
    raw_params = build_resnet18_params(pkey, num_class)
    params = prepare_params(raw_params)   # fold BN, pad + bf16-cast weights once
    x = jax.random.normal(xkey, (2, 3, 32, 32), jnp.float32)  # NCHW, like PyTorch
    logits = resnet18_forward(params, x)
    jax.block_until_ready(logits)
    assert logits.shape == (2, num_class), logits.shape
    assert bool(jnp.all(jnp.isfinite(logits)))
    print("KERNEL_OK")
</pallas_src>

<mosaic_0001>
module attributes {stable_mosaic.version = 11 : i64} {
  func.func @_mm_bias_kernel(%arg0: i32, %arg1: i32, %arg2: memref<256x160xbf16, #tpu.memory_space<vmem>>, %arg3: memref<160x64xbf16, #tpu.memory_space<vmem>>, %arg4: memref<1x64xf32, #tpu.memory_space<vmem>>, %arg5: memref<256x64xbf16, #tpu.memory_space<vmem>>) attributes {dimension_semantics = [#tpu.dimension_semantics<parallel>, #tpu.dimension_semantics<parallel>], iteration_bounds = array<i64: 2, 1>, scalar_prefetch = 0 : i64, scratch_operands = 0 : i64, tpu.core_type = #tpu.core_type<tc>, window_params = [{transform_indices = @transform_0, window_bounds = array<i64: 256, 160>}, {transform_indices = @transform_1, window_bounds = array<i64: 160, 64>}, {transform_indices = @transform_2, window_bounds = array<i64: 1, 64>}, {transform_indices = @transform_3, window_bounds = array<i64: 256, 64>}]} {
    %c0 = arith.constant 0 : index
    %c0_0 = arith.constant 0 : index
    %0 = vector.load %arg2[%c0, %c0_0] : memref<256x160xbf16, #tpu.memory_space<vmem>>, vector<256x160xbf16>
    %c0_1 = arith.constant 0 : index
    %c0_2 = arith.constant 0 : index
    %1 = vector.load %arg3[%c0_1, %c0_2] : memref<160x64xbf16, #tpu.memory_space<vmem>>, vector<160x64xbf16>
    %cst = arith.constant dense<0.000000e+00> : vector<256x64xf32>
    %2 = tpu.matmul %0, %1, %cst {dimension_numbers = #tpu.dot_dimension_numbers<[1], [0], [0], [1], [0, 0, 1, 1], [], []>} : vector<256x160xbf16>, vector<160x64xbf16>, vector<256x64xf32> -> vector<256x64xf32>
    %c0_3 = arith.constant 0 : index
    %c0_4 = arith.constant 0 : index
    %3 = vector.load %arg4[%c0_3, %c0_4] : memref<1x64xf32, #tpu.memory_space<vmem>>, vector<1x64xf32>
    %4 = vector.broadcast %3 : vector<1x64xf32> to vector<256x64xf32>
    %5 = arith.addf %2, %4 : vector<256x64xf32>
    %cst_5 = arith.constant 0.000000e+00 : f32
    %6 = vector.broadcast %cst_5 : f32 to vector<256x64xf32>
    %7 = arith.maximumf %5, %6 : vector<256x64xf32>
    %8 = arith.truncf %7 : vector<256x64xf32> to vector<256x64xbf16>
    %c0_6 = arith.constant 0 : index
    %c0_7 = arith.constant 0 : index
    %9 = vector.load %arg5[%c0_6, %c0_7] : memref<256x64xbf16, #tpu.memory_space<vmem>>, vector<256x64xbf16>
    tpu.vector_store %arg5[%c0_6, %c0_7], %8 {strides = array<i32>} : memref<256x64xbf16, #tpu.memory_space<vmem>>, vector<256x64xbf16>,
    return
  }
  func.func @transform_0(%arg0: i32, %arg1: i32) -> (i32, i32) {
    %c0_i32 = arith.constant 0 : i32
    %c0_i32_0 = arith.constant 0 : i32
    return %arg0, %c0_i32 : i32, i32
  }
  func.func @transform_1(%arg0: i32, %arg1: i32) -> (i32, i32) {
    %c0_i32 = arith.constant 0 : i32
    %c0_i32_0 = arith.constant 0 : i32
    return %c0_i32, %arg1 : i32, i32
  }
  func.func @transform_2(%arg0: i32, %arg1: i32) -> (i32, i32) {
    %c0_i32 = arith.constant 0 : i32
    %c0_i32_0 = arith.constant 0 : i32
    return %c0_i32, %arg1 : i32, i32
  }
  func.func @transform_3(%arg0: i32, %arg1: i32) -> (i32, i32) {
    %c0_i32 = arith.constant 0 : i32
    return %arg0, %arg1 : i32, i32
  }
}

</mosaic_0001>

<bundles_post_ra>
// kernel: tpu_custom_call.1
= control target key start
LH: loop header
LB: loop body
LE: loop exit
PB: predicated region body
PF: predicated region fallthrough
CT: control target
= control target key end

     0   :  { %s1283_s12 = smov 0   ;;  %s1285_s13 = smov 0   ;;  %s1503_s0 = inlined_call_operand.vmem [shape: bf16[512,160], index: 0, kind: input, shape index: {}]   ;;  %s1504_s1 = inlined_call_operand.vmem [shape: bf16[160,64], index: 1, kind: input, shape index: {}]   ;;  %s1505_s2 = inlined_call_operand.vmem [shape: f32[1,64], index: 2, kind: input, shape index: {}]   ;;  %s1506_s3 = inlined_call_operand.vmem [shape: bf16[512,64], index: 3, kind: output, shape index: {}]  }
   0x1   :  { %s1287_s14 = smov 0  }
   0x2 LB: > { %s25_s15 = sadd.s32 1, %s1256_s13  ;;  %p1003_p0 = scmp.ge.s32.totalorder %s1260_s14, 1  ;;  %s1260_s14 = sphi %s1287_s14, %s13_s14   ;;  %s1256_s13 = sphi %s1285_s13, %s1508_s13   ;;  %s1252_s12 = sphi %s1283_s12, %s1507_s12  }
   0x3   : > { %p27_p1 = scmp.ge.s32.totalorder %s25_s15, 2  ;;  %p170_p2 = scmp.lt.s32.totalorder %s1260_s14, 3 }
   0x5   : > { %s1510_s15 = smov (%p27_p1, %s25_s15), 0  ;;  %p171_p3 = pnand %p1003_p0, %p170_p2 }
   0x6   : > { %v1180_v0 = vld [vmem:[%s1504_s1] sm:$0xff] (!%p171_p3)   ;;  %v1262_v1 = vmov (!%p171_p3), 0   ;;  %s1004_s18 = sshll.u32 (!%p171_p3), %s1252_s12, 5  ;;  %v1181_v2 = vld [vmem:[%s1504_s1 + $0x8] sm:$0xff] (!%p171_p3)   ;;  %v1182_v3 = vld [vmem:[%s1504_s1 + $0x10] sm:$0xff] (!%p171_p3)   ;;  %vm492_vm0 = vcmask (!%p171_p3), 261120  }
   0x7   : > { %174 = sbr.rel (%p171_p3) target bundleno = 324 (0x144), region = 32  ;;  %541 = vmatprep.subr.bf16.mxu0 (!%p171_p3), %v1262_v1  ;;  %1135 = vmatprep.subr.bf16.mxu1 (!%p171_p3), %v1262_v1  ;;  %p206_p4 = scmp.lt.s32.totalorder (!%p171_p3), %s1004_s18, 63  ;;  %v1183_v4 = vld [vmem:[%s1504_s1 + $0x18] sm:$0xff] (!%p171_p3)   ;;  %v1184_v7 = vld [vmem:[%s1504_s1 + $0x20] sm:$0xff] (!%p171_p3)   ;;  %v1185_v8 = vld [vmem:[%s1504_s1 + $0x28] sm:$0xff] (!%p171_p3)   ;;  %vm862_vm1 = vcmask (!%p171_p3), 519168  }
   0x8   : > { %542 = vmatpush1.bf16.msra.mxu0 (!%p171_p3), %v1180_v0  ;;  %1145 = vmatpush1.bf16.msra.mxu1 (!%p171_p3), %v1180_v0  ;;  %v1186_v9 = vld [vmem:[%s1504_s1 + $0x30] sm:$0xff] (!%p171_p3)   ;;  %v1187_v10 = vld [vmem:[%s1504_s1 + $0x38] sm:$0xff] (!%p171_p3)   ;;  %v1188_v11 = vld [vmem:[%s1504_s1 + $0x40] sm:$0xff] (!%p171_p3)  }
   0x9   : > { %543 = vmatprep.subr.bf16.mxu0 (!%p171_p3), %v1262_v1  ;;  %1136 = vmatprep.subr.bf16.mxu1 (!%p171_p3), %v1262_v1  ;;  %v1189_v12 = vld [vmem:[%s1504_s1 + $0x48] sm:$0xff] (!%p171_p3)   ;;  %v1390_v43 = vld [vmem:[%s1505_s2] ss:$0 sm:$0xff] (!%p171_p3) }
   0xc   : > { %544 = vmatpush1.bf16.msra.mxu0 (!%p171_p3), %v1181_v2  ;;  %1146 = vmatpush1.bf16.msra.mxu1 (!%p171_p3), %v1181_v2 }
   0xd   : > { %545 = vmatprep.subr.bf16.mxu0 (!%p171_p3), %v1262_v1  ;;  %1137 = vmatprep.subr.bf16.mxu1 (!%p171_p3), %v1262_v1 }
   0xe   : > { %s1512_s18 = smov (!%p206_p4, %s1004_s18), 63 }
   0xf   : > { %s1102_s23 = sshll.u32 %s1512_s18, 3  ;;  %s1008_s20 = sshll.u32 %s1512_s18, 2 }
  0x10   : > { %s1316_s26 = scalar_lea.vmem %s1503_s0, %s1102_s23  ;;  %546 = vmatpush1.bf16.msra.mxu0 %v1182_v3  ;;  %1147 = vmatpush1.bf16.msra.mxu1 %v1182_v3  ;;  %s1400_s18 = scalar_lea.vmem %s1506_s3, %s1008_s20 }
  0x11   : > { %547 = vmatprep.subr.bf16.mxu0 %v1262_v1  ;;  %1138 = vmatprep.subr.bf16.mxu1 %v1262_v1  ;;  %v1192_v5 = vld [vmem:[%s1316_s26 + $0x4] ss:$8 sps:$4 sm:$0xff]   ;;  %v1190_v13 = vld [vmem:[%s1316_s26] ss:$8 sps:$4 sm:$0xff]   ;;  %v1196_v15 = vld [vmem:[%s1316_s26 + $0x14] ss:$8 sps:$4 sm:$0xff]  }
  0x12   : > { %v1195_v6 = vld [vmem:[%s1316_s26 + $0x84] ss:$8 sps:$4 sm:$0xff]   ;;  %1052 = vmatprep.mubr.msk.bf16.mxu0 %vm492_vm0, %v1192_v5  ;;  %v1193_v14 = vld [vmem:[%s1316_s26 + $0x80] ss:$8 sps:$4 sm:$0xff]   ;;  %v1198_v16 = vld [vmem:[%s1316_s26 + $0x94] ss:$8 sps:$4 sm:$0xff]  }
  0x13   : > { %1060 = vmatprep.mubr.msk.bf16.mxu1 %vm492_vm0, %v1195_v6  ;;  %v1200_v17 = vld [vmem:[%s1316_s26 + $0x10] ss:$8 sps:$4 sm:$0xff]   ;;  %v1202_v19 = vld [vmem:[%s1316_s26 + $0x24] ss:$8 sps:$4 sm:$0xff]   ;;  %v1206_v21 = vld [vmem:[%s1316_s26 + $0x20] ss:$8 sps:$4 sm:$0xff]  }
  0x14   : > { %548 = vmatpush1.bf16.msra.mxu0 %v1183_v4  ;;  %1148 = vmatpush1.bf16.msra.mxu1 %v1183_v4  ;;  %v1201_v18 = vld [vmem:[%s1316_s26 + $0x90] ss:$8 sps:$4 sm:$0xff]   ;;  %v1204_v20 = vld [vmem:[%s1316_s26 + $0xa4] ss:$8 sps:$4 sm:$0xff]   ;;  %v1207_v22 = vld [vmem:[%s1316_s26 + $0xa0] ss:$8 sps:$4 sm:$0xff]  }
  0x15   : > { %549 = vmatprep.subr.bf16.mxu0 %v1262_v1  ;;  %1139 = vmatprep.subr.bf16.mxu1 %v1262_v1  ;;  %v1208_v23 = vld [vmem:[%s1316_s26 + $0x34] ss:$8 sps:$4 sm:$0xff]   ;;  %v1212_v25 = vld [vmem:[%s1316_s26 + $0x30] ss:$8 sps:$4 sm:$0xff]   ;;  %v1214_v27 = vld [vmem:[%s1316_s26 + $0x44] ss:$8 sps:$4 sm:$0xff]  }
  0x16   : > { %v1210_v24 = vld [vmem:[%s1316_s26 + $0xb4] ss:$8 sps:$4 sm:$0xff]   ;;  %v1213_v26 = vld [vmem:[%s1316_s26 + $0xb0] ss:$8 sps:$4 sm:$0xff]   ;;  %v1216_v28 = vld [vmem:[%s1316_s26 + $0xc4] ss:$8 sps:$4 sm:$0xff]  }
  0x17   : > { %v1218_v29 = vld [vmem:[%s1316_s26 + $0x40] ss:$8 sps:$4 sm:$0xff]   ;;  %v1220_v31 = vld [vmem:[%s1316_s26 + $0x54] ss:$8 sps:$4 sm:$0xff]   ;;  %v1224_v33 = vld [vmem:[%s1316_s26 + $0x50] ss:$8 sps:$4 sm:$0xff]  }
  0x18   : > { %550 = vmatpush1.bf16.msra.mxu0 %v1184_v7  ;;  %1149 = vmatpush1.bf16.msra.mxu1 %v1184_v7  ;;  %v1219_v30 = vld [vmem:[%s1316_s26 + $0xc0] ss:$8 sps:$4 sm:$0xff]   ;;  %v1222_v32 = vld [vmem:[%s1316_s26 + $0xd4] ss:$8 sps:$4 sm:$0xff]   ;;  %v1225_v34 = vld [vmem:[%s1316_s26 + $0xd0] ss:$8 sps:$4 sm:$0xff]  }
  0x19   : > { %551 = vmatprep.subr.bf16.mxu0 %v1262_v1  ;;  %1140 = vmatprep.subr.bf16.mxu1 %v1262_v1  ;;  %v1226_v35 = vld [vmem:[%s1316_s26 + $0x64] ss:$8 sps:$4 sm:$0xff]   ;;  %v1230_v37 = vld [vmem:[%s1316_s26 + $0x60] ss:$8 sps:$4 sm:$0xff]   ;;  %v1232_v39 = vld [vmem:[%s1316_s26 + $0x74] ss:$8 sps:$4 sm:$0xff]  }
  0x1a   : > { %v1228_v36 = vld [vmem:[%s1316_s26 + $0xe4] ss:$8 sps:$4 sm:$0xff]   ;;  %v1231_v38 = vld [vmem:[%s1316_s26 + $0xe0] ss:$8 sps:$4 sm:$0xff]   ;;  %v1234_v40 = vld [vmem:[%s1316_s26 + $0xf4] ss:$8 sps:$4 sm:$0xff]  }
  0x1b   : > { %v1236_v41 = vld [vmem:[%s1316_s26 + $0x70] ss:$8 sps:$4 sm:$0xff]  }
  0x1c   : > { %552 = vmatpush1.bf16.msra.mxu0 %v1185_v8  ;;  %1150 = vmatpush1.bf16.msra.mxu1 %v1185_v8  ;;  %v1237_v42 = vld [vmem:[%s1316_s26 + $0xf0] ss:$8 sps:$4 sm:$0xff]  }
  0x1d   : > { %553 = vmatprep.subr.bf16.mxu0 %v1262_v1  ;;  %1141 = vmatprep.subr.bf16.mxu1 %v1262_v1 }
  0x20   : > { %554 = vmatpush1.bf16.msra.mxu0 %v1186_v9  ;;  %1151 = vmatpush1.bf16.msra.mxu1 %v1186_v9 }
  0x21   : > { %555 = vmatprep.subr.bf16.mxu0 %v1262_v1  ;;  %1142 = vmatprep.subr.bf16.mxu1 %v1262_v1 }
  0x24   : > { %556 = vmatpush1.bf16.msra.mxu0 %v1187_v10  ;;  %1152 = vmatpush1.bf16.msra.mxu1 %v1187_v10 }
  0x25   : > { %557 = vmatprep.subr.bf16.mxu0 %v1262_v1  ;;  %1143 = vmatprep.subr.bf16.mxu1 %v1262_v1 }
  0x28   : > { %558 = vmatpush1.bf16.msra.mxu0 %v1188_v11  ;;  %1153 = vmatpush1.bf16.msra.mxu1 %v1188_v11 }
  0x29   : > { %559 = vmatprep.subr.bf16.mxu0 %v1262_v1  ;;  %1144 = vmatprep.subr.bf16.mxu1 %v1262_v1 }
  0x2c   : > { %560 = vmatpush1.bf16.msra.mxu0 %v1189_v12  ;;  %1154 = vmatpush1.bf16.msra.mxu1 %v1189_v12 }
  0x2f   : > { %574 = vmatmul.mubr.bf16.vlgmr.msra.gmra.mrb[0].mxu0 %v1190_v13  ;;  %638 = vmatmul.mubr.bf16.vlgmr.msra.gmra.mrb[0].mxu1 %v1193_v14 }
  0x30   : > { %1053 = vmatprep.mubr.msk.bf16.mxu0 %vm492_vm0, %v1196_v15  ;;  %1061 = vmatprep.mubr.msk.bf16.mxu1 %vm492_vm0, %v1198_v16 }
  0x37   : > { %582 = vmatmul.mubr.bf16.gmra.mrb[4].mxu0 %v1200_v17  ;;  %646 = vmatmul.mubr.bf16.gmra.mrb[4].mxu1 %v1201_v18 }
  0x38   : > { %1054 = vmatprep.mubr.msk.bf16.mxu0 %vm492_vm0, %v1202_v19  ;;  %1062 = vmatprep.mubr.msk.bf16.mxu1 %vm492_vm0, %v1204_v20 }
  0x3f   : > { %590 = vmatmul.mubr.bf16.gmra.mrb[8].mxu0 %v1206_v21  ;;  %654 = vmatmul.mubr.bf16.gmra.mrb[8].mxu1 %v1207_v22 }
  0x40   : > { %1055 = vmatprep.mubr.msk.bf16.mxu0 %vm492_vm0, %v1208_v23  ;;  %1063 = vmatprep.mubr.msk.bf16.mxu1 %vm492_vm0, %v1210_v24 }
  0x47   : > { %598 = vmatmul.mubr.bf16.gmra.mrb[12].mxu0 %v1212_v25  ;;  %662 = vmatmul.mubr.bf16.gmra.mrb[12].mxu1 %v1213_v26 }
  0x48   : > { %1056 = vmatprep.mubr.msk.bf16.mxu0 %vm492_vm0, %v1214_v27  ;;  %1064 = vmatprep.mubr.msk.bf16.mxu1 %vm492_vm0, %v1216_v28 }
  0x4f   : > { %606 = vmatmul.mubr.bf16.gmra.mrb[16].mxu0 %v1218_v29  ;;  %670 = vmatmul.mubr.bf16.gmra.mrb[16].mxu1 %v1219_v30 }
  0x50   : > { %1057 = vmatprep.mubr.msk.bf16.mxu0 %vm492_vm0, %v1220_v31  ;;  %1065 = vmatprep.mubr.msk.bf16.mxu1 %vm492_vm0, %v1222_v32 }
  0x57   : > { %614 = vmatmul.mubr.bf16.gmra.mrb[20].mxu0 %v1224_v33  ;;  %678 = vmatmul.mubr.bf16.gmra.mrb[20].mxu1 %v1225_v34 }
  0x58   : > { %1058 = vmatprep.mubr.msk.bf16.mxu0 %vm492_vm0, %v1226_v35  ;;  %1066 = vmatprep.mubr.msk.bf16.mxu1 %vm492_vm0, %v1228_v36 }
  0x5f   : > { %622 = vmatmul.mubr.bf16.gmra.mrb[24].mxu0 %v1230_v37  ;;  %686 = vmatmul.mubr.bf16.gmra.mrb[24].mxu1 %v1231_v38 }
  0x60   : > { %1059 = vmatprep.mubr.msk.bf16.mxu0 %vm492_vm0, %v1232_v39  ;;  %1067 = vmatprep.mubr.msk.bf16.mxu1 %vm492_vm0, %v1234_v40 }
  0x67   : > { %630 = vmatmul.mubr.bf16.gmra.mrb[28].mxu0 %v1236_v41  ;;  %694 = vmatmul.mubr.bf16.gmra.mrb[28].mxu1 %v1237_v42 }
 0x102   : > { %v575_v44 = vpop.f32.mrb[0].mxu0  ;;  %v639_v45 = vpop.f32.mrb[0].mxu1 }
 0x103   : > { %v576_v46 = vadd.f32 %v1390_v43, %v575_v44  ;;  %v640_v47 = vadd.f32 %v1390_v43, %v639_v45  ;;  %v577_v48 = vpop.f32.mrb[1].mxu0  ;;  %v641_v49 = vpop.f32.mrb[1].mxu1 }
 0x104   : > { %v578_v50 = vpop.f32.mrb[2].mxu0  ;;  %v642_v51 = vpop.f32.mrb[2].mxu1 }
 0x105   : > { %v702_v52 = vmax.f32 %v576_v46, 0.0  ;;  %v718_v53 = vmax.f32 %v640_v47, 0.0  ;;  %v579_v54 = vadd.f32 %v1390_v43, %v578_v50  ;;  %v643_v55 = vadd.f32 %v1390_v43, %v642_v51  ;;  %v580_v56 = vpop.f32.mrb[3].mxu0  ;;  %v644_v57 = vpop.f32.mrb[3].mxu1 }
 0x107   : > { %v1103_v58 = vpack.c.bf16 %v702_v52, %v702_v52  ;;  %v1119_v59 = vpack.c.bf16 %v718_v53, %v718_v53  ;;  %v703_v60 = vmax.f32 %v579_v54, 0.0  ;;  %v719_v61 = vmax.f32 %v643_v55, 0.0 }
 0x109   : > { %863 = vst.msk [vmem:[%s1400_s18] sm:$0xf] %vm862_vm1, %v1103_v58  ;;  %879 = vst.msk [vmem:[%s1400_s18 + $0x40] sm:$0xf] %vm862_vm1, %v1119_v59  ;;  %v1104_v62 = vpack.c.bf16 %v703_v60, %v703_v60  ;;  %v1120_v63 = vpack.c.bf16 %v719_v61, %v719_v61 }
 0x10a   : > { %v583_v0 = vpop.f32.mrb[4].mxu0  ;;  %v647_v1 = vpop.f32.mrb[4].mxu1 }
 0x10b   : > { %864 = vst.msk [vmem:[%s1400_s18 + $0x4] sm:$0xf] %vm862_vm1, %v1104_v62  ;;  %880 = vst.msk [vmem:[%s1400_s18 + $0x44] sm:$0xf] %vm862_vm1, %v1120_v63  ;;  %v584_v2 = vadd.f32 %v1390_v43, %v583_v0  ;;  %v648_v3 = vadd.f32 %v1390_v43, %v647_v1  ;;  %v585_v4 = vpop.f32.mrb[5].mxu0  ;;  %v649_v5 = vpop.f32.mrb[5].mxu1 }
 0x10c   : > { %v586_v6 = vpop.f32.mrb[6].mxu0  ;;  %v650_v7 = vpop.f32.mrb[6].mxu1 }
 0x10d   : > { %v704_v8 = vmax.f32 %v584_v2, 0.0  ;;  %v720_v9 = vmax.f32 %v648_v3, 0.0  ;;  %v587_v10 = vadd.f32 %v1390_v43, %v586_v6  ;;  %v651_v11 = vadd.f32 %v1390_v43, %v650_v7  ;;  %v588_v12 = vpop.f32.mrb[7].mxu0  ;;  %v652_v13 = vpop.f32.mrb[7].mxu1 }
 0x10f   : > { %v1105_v14 = vpack.c.bf16 %v704_v8, %v704_v8  ;;  %v1121_v15 = vpack.c.bf16 %v720_v9, %v720_v9  ;;  %v705_v16 = vmax.f32 %v587_v10, 0.0  ;;  %v721_v17 = vmax.f32 %v651_v11, 0.0 }
 0x111   : > { %865 = vst.msk [vmem:[%s1400_s18 + $0x8] sm:$0xf] %vm862_vm1, %v1105_v14  ;;  %881 = vst.msk [vmem:[%s1400_s18 + $0x48] sm:$0xf] %vm862_vm1, %v1121_v15  ;;  %v1106_v18 = vpack.c.bf16 %v705_v16, %v705_v16  ;;  %v1122_v19 = vpack.c.bf16 %v721_v17, %v721_v17 }
 0x112   : > { %v591_v20 = vpop.f32.mrb[8].mxu0  ;;  %v655_v21 = vpop.f32.mrb[8].mxu1 }
 0x113   : > { %866 = vst.msk [vmem:[%s1400_s18 + $0xc] sm:$0xf] %vm862_vm1, %v1106_v18  ;;  %882 = vst.msk [vmem:[%s1400_s18 + $0x4c] sm:$0xf] %vm862_vm1, %v1122_v19  ;;  %v592_v22 = vadd.f32 %v1390_v43, %v591_v20  ;;  %v656_v23 = vadd.f32 %v1390_v43, %v655_v21  ;;  %v593_v24 = vpop.f32.mrb[9].mxu0  ;;  %v657_v25 = vpop.f32.mrb[9].mxu1 }
 0x114   : > { %v594_v26 = vpop.f32.mrb[10].mxu0  ;;  %v658_v27 = vpop.f32.mrb[10].mxu1 }
 0x115   : > { %v706_v28 = vmax.f32 %v592_v22, 0.0  ;;  %v722_v29 = vmax.f32 %v656_v23, 0.0  ;;  %v595_v30 = vadd.f32 %v1390_v43, %v594_v26  ;;  %v659_v31 = vadd.f32 %v1390_v43, %v658_v27  ;;  %v596_v32 = vpop.f32.mrb[11].mxu0  ;;  %v660_v33 = vpop.f32.mrb[11].mxu1 }
 0x117   : > { %v1107_v34 = vpack.c.bf16 %v706_v28, %v706_v28  ;;  %v1123_v35 = vpack.c.bf16 %v722_v29, %v722_v29  ;;  %v707_v36 = vmax.f32 %v595_v30, 0.0  ;;  %v723_v37 = vmax.f32 %v659_v31, 0.0 }
 0x119   : > { %867 = vst.msk [vmem:[%s1400_s18 + $0x10] sm:$0xf] %vm862_vm1, %v1107_v34  ;;  %883 = vst.msk [vmem:[%s1400_s18 + $0x50] sm:$0xf] %vm862_vm1, %v1123_v35  ;;  %v1108_v38 = vpack.c.bf16 %v707_v36, %v707_v36  ;;  %v1124_v39 = vpack.c.bf16 %v723_v37, %v723_v37 }
 0x11a   : > { %v599_v40 = vpop.f32.mrb[12].mxu0  ;;  %v663_v41 = vpop.f32.mrb[12].mxu1 }
 0x11b   : > { %868 = vst.msk [vmem:[%s1400_s18 + $0x14] sm:$0xf] %vm862_vm1, %v1108_v38  ;;  %884 = vst.msk [vmem:[%s1400_s18 + $0x54] sm:$0xf] %vm862_vm1, %v1124_v39  ;;  %v600_v42 = vadd.f32 %v1390_v43, %v599_v40  ;;  %v664_v44 = vadd.f32 %v1390_v43, %v663_v41  ;;  %v601_v45 = vpop.f32.mrb[13].mxu0  ;;  %v665_v46 = vpop.f32.mrb[13].mxu1 }
 0x11c   : > { %v602_v47 = vpop.f32.mrb[14].mxu0  ;;  %v666_v48 = vpop.f32.mrb[14].mxu1 }
 0x11d   : > { %v708_v49 = vmax.f32 %v600_v42, 0.0  ;;  %v724_v50 = vmax.f32 %v664_v44, 0.0  ;;  %v603_v51 = vadd.f32 %v1390_v43, %v602_v47  ;;  %v667_v52 = vadd.f32 %v1390_v43, %v666_v48  ;;  %v604_v53 = vpop.f32.mrb[15].mxu0  ;;  %v668_v54 = vpop.f32.mrb[15].mxu1 }
 0x11f   : > { %v1109_v55 = vpack.c.bf16 %v708_v49, %v708_v49  ;;  %v1125_v56 = vpack.c.bf16 %v724_v50, %v724_v50  ;;  %v709_v57 = vmax.f32 %v603_v51, 0.0  ;;  %v725_v58 = vmax.f32 %v667_v52, 0.0 }
 0x121   : > { %869 = vst.msk [vmem:[%s1400_s18 + $0x18] sm:$0xf] %vm862_vm1, %v1109_v55  ;;  %885 = vst.msk [vmem:[%s1400_s18 + $0x58] sm:$0xf] %vm862_vm1, %v1125_v56  ;;  %v1110_v59 = vpack.c.bf16 %v709_v57, %v709_v57  ;;  %v1126_v60 = vpack.c.bf16 %v725_v58, %v725_v58 }
 0x122   : > { %v607_v61 = vpop.f32.mrb[16].mxu0  ;;  %v671_v62 = vpop.f32.mrb[16].mxu1 }
 0x123   : > { %870 = vst.msk [vmem:[%s1400_s18 + $0x1c] sm:$0xf] %vm862_vm1, %v1110_v59  ;;  %886 = vst.msk [vmem:[%s1400_s18 + $0x5c] sm:$0xf] %vm862_vm1, %v1126_v60  ;;  %v608_v63 = vadd.f32 %v1390_v43, %v607_v61  ;;  %v672_v0 = vadd.f32 %v1390_v43, %v671_v62  ;;  %v609_v1 = vpop.f32.mrb[17].mxu0  ;;  %v673_v2 = vpop.f32.mrb[17].mxu1 }
 0x124   : > { %v610_v3 = vpop.f32.mrb[18].mxu0  ;;  %v674_v4 = vpop.f32.mrb[18].mxu1 }
 0x125   : > { %v710_v5 = vmax.f32 %v608_v63, 0.0  ;;  %v726_v6 = vmax.f32 %v672_v0, 0.0  ;;  %v611_v7 = vadd.f32 %v1390_v43, %v610_v3  ;;  %v675_v8 = vadd.f32 %v1390_v43, %v674_v4  ;;  %v612_v9 = vpop.f32.mrb[19].mxu0  ;;  %v676_v10 = vpop.f32.mrb[19].mxu1 }
 0x127   : > { %v1111_v11 = vpack.c.bf16 %v710_v5, %v710_v5  ;;  %v1127_v12 = vpack.c.bf16 %v726_v6, %v726_v6  ;;  %v711_v13 = vmax.f32 %v611_v7, 0.0  ;;  %v727_v14 = vmax.f32 %v675_v8, 0.0 }
 0x129   : > { %871 = vst.msk [vmem:[%s1400_s18 + $0x20] sm:$0xf] %vm862_vm1, %v1111_v11  ;;  %887 = vst.msk [vmem:[%s1400_s18 + $0x60] sm:$0xf] %vm862_vm1, %v1127_v12  ;;  %v1112_v15 = vpack.c.bf16 %v711_v13, %v711_v13  ;;  %v1128_v16 = vpack.c.bf16 %v727_v14, %v727_v14 }
 0x12a   : > { %v615_v17 = vpop.f32.mrb[20].mxu0  ;;  %v679_v18 = vpop.f32.mrb[20].mxu1 }
 0x12b   : > { %872 = vst.msk [vmem:[%s1400_s18 + $0x24] sm:$0xf] %vm862_vm1, %v1112_v15  ;;  %888 = vst.msk [vmem:[%s1400_s18 + $0x64] sm:$0xf] %vm862_vm1, %v1128_v16  ;;  %v616_v19 = vadd.f32 %v1390_v43, %v615_v17  ;;  %v680_v20 = vadd.f32 %v1390_v43, %v679_v18  ;;  %v617_v21 = vpop.f32.mrb[21].mxu0  ;;  %v681_v22 = vpop.f32.mrb[21].mxu1 }
 0x12c   : > { %v618_v23 = vpop.f32.mrb[22].mxu0  ;;  %v682_v24 = vpop.f32.mrb[22].mxu1 }
 0x12d   : > { %v712_v25 = vmax.f32 %v616_v19, 0.0  ;;  %v728_v26 = vmax.f32 %v680_v20, 0.0  ;;  %v619_v27 = vadd.f32 %v1390_v43, %v618_v23  ;;  %v683_v28 = vadd.f32 %v1390_v43, %v682_v24  ;;  %v620_v29 = vpop.f32.mrb[23].mxu0  ;;  %v684_v30 = vpop.f32.mrb[23].mxu1 }
 0x12f   : > { %v1113_v31 = vpack.c.bf16 %v712_v25, %v712_v25  ;;  %v1129_v32 = vpack.c.bf16 %v728_v26, %v728_v26  ;;  %v713_v33 = vmax.f32 %v619_v27, 0.0  ;;  %v729_v34 = vmax.f32 %v683_v28, 0.0 }
 0x131   : > { %873 = vst.msk [vmem:[%s1400_s18 + $0x28] sm:$0xf] %vm862_vm1, %v1113_v31  ;;  %889 = vst.msk [vmem:[%s1400_s18 + $0x68] sm:$0xf] %vm862_vm1, %v1129_v32  ;;  %v1114_v35 = vpack.c.bf16 %v713_v33, %v713_v33  ;;  %v1130_v36 = vpack.c.bf16 %v729_v34, %v729_v34 }
 0x132   : > { %v623_v37 = vpop.f32.mrb[24].mxu0  ;;  %v687_v38 = vpop.f32.mrb[24].mxu1 }
 0x133   : > { %874 = vst.msk [vmem:[%s1400_s18 + $0x2c] sm:$0xf] %vm862_vm1, %v1114_v35  ;;  %890 = vst.msk [vmem:[%s1400_s18 + $0x6c] sm:$0xf] %vm862_vm1, %v1130_v36  ;;  %v624_v39 = vadd.f32 %v1390_v43, %v623_v37  ;;  %v688_v40 = vadd.f32 %v1390_v43, %v687_v38  ;;  %v625_v41 = vpop.f32.mrb[25].mxu0  ;;  %v689_v42 = vpop.f32.mrb[25].mxu1 }
 0x134   : > { %v626_v44 = vpop.f32.mrb[26].mxu0  ;;  %v690_v45 = vpop.f32.mrb[26].mxu1 }
 0x135   : > { %v714_v46 = vmax.f32 %v624_v39, 0.0  ;;  %v730_v47 = vmax.f32 %v688_v40, 0.0  ;;  %v627_v48 = vadd.f32 %v1390_v43, %v626_v44  ;;  %v691_v49 = vadd.f32 %v1390_v43, %v690_v45  ;;  %v628_v50 = vpop.f32.mrb[27].mxu0  ;;  %v692_v51 = vpop.f32.mrb[27].mxu1 }
 0x137   : > { %v1115_v52 = vpack.c.bf16 %v714_v46, %v714_v46  ;;  %v1131_v53 = vpack.c.bf16 %v730_v47, %v730_v47  ;;  %v715_v54 = vmax.f32 %v627_v48, 0.0  ;;  %v731_v55 = vmax.f32 %v691_v49, 0.0 }
 0x139   : > { %875 = vst.msk [vmem:[%s1400_s18 + $0x30] sm:$0xf] %vm862_vm1, %v1115_v52  ;;  %891 = vst.msk [vmem:[%s1400_s18 + $0x70] sm:$0xf] %vm862_vm1, %v1131_v53  ;;  %v1116_v56 = vpack.c.bf16 %v715_v54, %v715_v54  ;;  %v1132_v57 = vpack.c.bf16 %v731_v55, %v731_v55 }
 0x13a   : > { %v631_v58 = vpop.f32.mrb[28].mxu0  ;;  %v695_v59 = vpop.f32.mrb[28].mxu1 }
 0x13b   : > { %876 = vst.msk [vmem:[%s1400_s18 + $0x34] sm:$0xf] %vm862_vm1, %v1116_v56  ;;  %892 = vst.msk [vmem:[%s1400_s18 + $0x74] sm:$0xf] %vm862_vm1, %v1132_v57  ;;  %v632_v60 = vadd.f32 %v1390_v43, %v631_v58  ;;  %v696_v61 = vadd.f32 %v1390_v43, %v695_v59  ;;  %v633_v62 = vpop.f32.mrb[29].mxu0  ;;  %v697_v63 = vpop.f32.mrb[29].mxu1 }
 0x13c   : > { %v634_v0 = vpop.f32.mrb[30].mxu0  ;;  %v698_v1 = vpop.f32.mrb[30].mxu1 }
 0x13d   : > { %v716_v2 = vmax.f32 %v632_v60, 0.0  ;;  %v732_v3 = vmax.f32 %v696_v61, 0.0  ;;  %v635_v4 = vadd.f32 %v1390_v43, %v634_v0  ;;  %v699_v5 = vadd.f32 %v1390_v43, %v698_v1  ;;  %v636_v6 = vpop.f32.mrb[31].mxu0  ;;  %v700_v7 = vpop.f32.mrb[31].mxu1 }
 0x13f   : > { %v1117_v8 = vpack.c.bf16 %v716_v2, %v716_v2  ;;  %v1133_v9 = vpack.c.bf16 %v732_v3, %v732_v3  ;;  %v717_v10 = vmax.f32 %v635_v4, 0.0  ;;  %v733_v11 = vmax.f32 %v699_v5, 0.0 }
 0x141   : > { %877 = vst.msk [vmem:[%s1400_s18 + $0x38] sm:$0xf] %vm862_vm1, %v1117_v8  ;;  %893 = vst.msk [vmem:[%s1400_s18 + $0x78] sm:$0xf] %vm862_vm1, %v1133_v9  ;;  %v1118_v12 = vpack.c.bf16 %v717_v10, %v717_v10  ;;  %v1134_v13 = vpack.c.bf16 %v733_v11, %v733_v11 }
 0x143   : > { %878 = vst.msk [vmem:[%s1400_s18 + $0x3c] sm:$0xf] %vm862_vm1, %v1118_v12  ;;  %894 = vst.msk [vmem:[%s1400_s18 + $0x7c] sm:$0xf] %vm862_vm1, %v1134_v13 }
 0x144 PF: > { %s13_s14 = sadd.s32 1, %s1260_s14   ;;  %s1507_s12 = smov %s1256_s13 }
 0x145   : > { %p10_p5 = scmp.ge.s32.totalorder %s13_s14, 4   ;;  %s1508_s13 = smov %s1510_s15 }
 0x147   :  { %12 = sbr.rel (!%p10_p5) target bundleno = 2 (0x2), region = 68 }

</bundles_post_ra>
